<compile_context>
chip_gen: v7x
topology: tpu7x:2x2x1
jax: 0.10.0
libtpu: 0.0.40
codegen_flags: <defaults>
</compile_context>

<pallas_src>
import functools
import math

import jax
import jax.numpy as jnp
from jax import lax
from jax.experimental import pallas as pl
from jax.experimental.pallas import tpu as pltpu

_INV_SQRT2 = 0.7071067811865476
_LN_EPS = 1e-5  # torch.nn.LayerNorm default


# --------------------------------------------------------------------------
# Small helpers
# --------------------------------------------------------------------------
def _round_up(x, m):
    return ((x + m - 1) // m) * m


def _cdiv(a, b):
    return -(-a // b)


def _pad_to(a, shape):
    """Zero-pad array `a` (trailing side) up to `shape`."""
    pads = [(0, t - s) for s, t in zip(a.shape, shape)]
    if all(p == (0, 0) for p in pads):
        return a
    return jnp.pad(a, pads)


def _device_defaults():
    """Generation-aware tiling / VMEM defaults."""
    kind = ""
    try:
        kind = jax.devices()[0].device_kind.lower()
    except Exception:  # pragma: no cover - defensive
        pass
    if "v7" in kind:
        cfg = dict(tile_rows=512, align=256, vmem_limit=48 << 20, megacore=True)
    elif "v6" in kind:
        cfg = dict(tile_rows=1024, align=256, vmem_limit=100 << 20, megacore=False)
    elif "v5" in kind:
        cfg = dict(tile_rows=512, align=128, vmem_limit=100 << 20, megacore=False)
    else:  # unknown generation: conservative
        cfg = dict(tile_rows=512, align=128, vmem_limit=48 << 20, megacore=False)
    # Never ask for more than ~82% of whatever the chip actually has.
    try:
        cap = pltpu.get_tpu_info().vmem_capacity_bytes
        cfg["vmem_limit"] = min(cfg["vmem_limit"], int(cap * 0.82))
    except Exception:  # pragma: no cover - defensive
        pass
    return cfg


def _vmem_estimate(tm, tk, din_pad, h_pad, dout_pad, dt_bytes, resident):
    """Conservative VMEM working-set estimate (double-buffered pipeline)."""
    io = 2 * tm * din_pad * dt_bytes          # x row tile
    io += 2 * tm * dout_pad * dt_bytes        # output row tile
    if resident:
        w = 2 * (din_pad * h_pad + h_pad * dout_pad) * dt_bytes
        inter = tm * h_pad * (4 + dt_bytes)   # f32 hidden + bf16 recast
    else:
        w = 2 * (din_pad + dout_pad) * tk * dt_bytes
        inter = tm * tk * (4 + dt_bytes)
    acc = tm * dout_pad * 4                   # f32 accumulator / pre-LN y
    small = 2 * (h_pad + 3 * dout_pad) * dt_bytes + (1 << 20)
    return io + w + inter + acc + small


# --------------------------------------------------------------------------
# Kernels
# --------------------------------------------------------------------------
def _layer_norm(y, gamma, beta, d_out):
    """Two-pass LayerNorm over the last axis of f32 `y`.

    Padded feature columns (index >= d_out) are exactly zero, so the mean is
    sum / d_out; the centered pass masks padded columns explicitly.
    """
    inv_n = 1.0 / d_out
    mu = jnp.sum(y, axis=-1, keepdims=True) * inv_n
    col = lax.broadcasted_iota(jnp.int32, y.shape, dimension=1)
    yc = jnp.where(col < d_out, y - mu, 0.0)
    var = jnp.sum(yc * yc, axis=-1, keepdims=True) * inv_n
    y_hat = (y - mu) * lax.rsqrt(var + _LN_EPS)
    return y_hat * gamma.astype(jnp.float32) + beta.astype(jnp.float32)


def _gelu_exact(h):
    # exact (erf-based) GELU in f32, matching torch.nn.GELU default
    return 0.5 * h * (1.0 + lax.erf(h * _INV_SQRT2))


def _mlp_kernel_resident(x_ref, w1_ref, b1_ref, w2_ref, b2_ref, g_ref, beta_ref,
                         o_ref, *, d_out):
    """Weight-resident path: full w1/w2 in VMEM, grid = (row_tiles,)."""
    h = jnp.dot(x_ref[...], w1_ref[...], preferred_element_type=jnp.float32)
    h = _gelu_exact(h + b1_ref[...].astype(jnp.float32))
    y = jnp.dot(h.astype(x_ref.dtype), w2_ref[...],
                preferred_element_type=jnp.float32)
    y = y + b2_ref[...].astype(jnp.float32)
    o_ref[...] = _layer_norm(y, g_ref[...], beta_ref[...], d_out).astype(o_ref.dtype)


def _mlp_kernel_ksplit(x_ref, w1_ref, b1_ref, w2_ref, b2_ref, g_ref, beta_ref,
                       o_ref, acc_ref, *, d_out):
    """K-split path: hidden dim tiled on grid axis 1, f32 VMEM accumulator."""
    k = pl.program_id(1)
    nk = pl.num_programs(1)

    @pl.when(k == 0)
    def _():
        acc_ref[...] = jnp.zeros_like(acc_ref)

    # fc1 chunk (MXU, native dtype operands, f32 accumulate)
    h = jnp.dot(x_ref[...], w1_ref[...], preferred_element_type=jnp.float32)
    h = _gelu_exact(h + b1_ref[...].astype(jnp.float32))

    # fc2 partial for this hidden chunk
    partial = jnp.dot(h.astype(x_ref.dtype), w2_ref[...],
                      preferred_element_type=jnp.float32)

    @pl.when(k < nk - 1)
    def _():
        acc_ref[...] += partial

    # Epilogue fused with the last partial (saves one acc store+load round trip)
    @pl.when(k == nk - 1)
    def _():
        y = acc_ref[...] + partial + b2_ref[...].astype(jnp.float32)
        o_ref[...] = _layer_norm(y, g_ref[...], beta_ref[...], d_out).astype(o_ref.dtype)


# --------------------------------------------------------------------------
# Wrapper
# --------------------------------------------------------------------------
def mlp_forward(x, params, *, compute_dtype=jnp.bfloat16, weight_resident=None,
                tile_rows=None, tile_k=512):
    """x: (..., in_features). Returns (..., out_features) in x.dtype.

    compute_dtype: dtype of the MXU operands (x / w1 / w2 / GELU output).
        Default bfloat16 for full MXU throughput; pass jnp.float32 (or None)
        for exact-precision matmuls.  Accumulation / GELU / LayerNorm math is
        always f32.
    weight_resident: None = auto (VMEM-budget based), True/False = force.
    """
    w1, b1, w2, b2, gamma, beta = params
    *lead, d_in = x.shape
    h_dim = w1.shape[1]
    d_out = w2.shape[1]
    m = math.prod(lead) if lead else 1

    cfg = _device_defaults()
    align = cfg["align"]
    vmem_limit = cfg["vmem_limit"]
    budget = int(vmem_limit * 0.9)

    cdt = jnp.dtype(compute_dtype) if compute_dtype is not None else jnp.dtype(x.dtype)
    dt_bytes = cdt.itemsize

    # ---- padded feature sizes (lane-dense, MXU-friendly alignment) ---------
    din_pad = _round_up(d_in, align)
    dout_pad = _round_up(d_out, align)
    h_full = _round_up(h_dim, align)

    # ---- row tile ----------------------------------------------------------
    tm = tile_rows if tile_rows is not None else cfg["tile_rows"]
    tm = _round_up(min(tm, _round_up(m, 8)), 8)
    # v7x megacore: make sure the "parallel" row axis has >= 2 programs
    if cfg["megacore"] and m > 8:
        while tm > 8 and _cdiv(m, tm) < 2:
            tm = _round_up(max(8, (tm + 1) // 2), 8)

    # ---- resident vs K-split decision (VMEM budget) ------------------------
    if weight_resident is None:
        resident = _vmem_estimate(tm, h_full, din_pad, h_full, dout_pad,
                                  dt_bytes, True) <= budget
    else:
        resident = bool(weight_resident)

    if resident:
        tk = h_pad = h_full
    else:
        tk = _round_up(min(_round_up(tile_k, align), h_full), align)
        # shrink tm, then tk, until the working set fits the budget
        while (_vmem_estimate(tm, tk, din_pad, _round_up(h_dim, tk), dout_pad,
                              dt_bytes, False) > budget
               and (tm > 128 or tk > align)):
            if tm > 128:
                tm = _round_up(max(8, tm // 2), 8)
            else:
                tk = _round_up(max(align, tk // 2), align)
        h_pad = _round_up(h_dim, tk)

    m_pad = _round_up(m, tm)

    # ---- pad / cast operands (zero padding is inert for this computation) --
    x2d = _pad_to(x.reshape(m, d_in).astype(cdt), (m_pad, din_pad))
    w1_p = _pad_to(w1.astype(cdt), (din_pad, h_pad))
    w2_p = _pad_to(w2.astype(cdt), (h_pad, dout_pad))
    b1_p = _pad_to(b1.reshape(1, h_dim), (1, h_pad))
    b2_p = _pad_to(b2.reshape(1, d_out), (1, dout_pad))
    g_p = _pad_to(gamma.reshape(1, d_out), (1, dout_pad))
    beta_p = _pad_to(beta.reshape(1, d_out), (1, dout_pad))

    out_shape = jax.ShapeDtypeStruct((m_pad, dout_pad), x.dtype)

    if resident:
        grid = (m_pad // tm,)
        out = pl.pallas_call(
            functools.partial(_mlp_kernel_resident, d_out=d_out),
            out_shape=out_shape,
            grid_spec=pltpu.PrefetchScalarGridSpec(
                num_scalar_prefetch=0,
                grid=grid,
                in_specs=[
                    pl.BlockSpec((tm, din_pad), lambda i: (i, 0)),      # x tile
                    pl.BlockSpec((din_pad, h_pad), lambda i: (0, 0)),   # w1 (resident)
                    pl.BlockSpec((1, h_pad), lambda i: (0, 0)),         # b1
                    pl.BlockSpec((h_pad, dout_pad), lambda i: (0, 0)),  # w2 (resident)
                    pl.BlockSpec((1, dout_pad), lambda i: (0, 0)),      # b2
                    pl.BlockSpec((1, dout_pad), lambda i: (0, 0)),      # ln gamma
                    pl.BlockSpec((1, dout_pad), lambda i: (0, 0)),      # ln beta
                ],
                out_specs=pl.BlockSpec((tm, dout_pad), lambda i: (i, 0)),
            ),
            compiler_params=pltpu.CompilerParams(
                dimension_semantics=("parallel",),
                vmem_limit_bytes=vmem_limit,
            ),
        )(x2d, w1_p, b1_p, w2_p, b2_p, g_p, beta_p)
    else:
        grid = (m_pad // tm, h_pad // tk)
        out = pl.pallas_call(
            functools.partial(_mlp_kernel_ksplit, d_out=d_out),
            out_shape=out_shape,
            grid_spec=pltpu.PrefetchScalarGridSpec(
                num_scalar_prefetch=0,
                grid=grid,
                in_specs=[
                    pl.BlockSpec((tm, din_pad), lambda i, k: (i, 0)),    # x tile
                    pl.BlockSpec((din_pad, tk), lambda i, k: (0, k)),    # w1 K-slice
                    pl.BlockSpec((1, tk), lambda i, k: (0, k)),          # b1 K-slice
                    pl.BlockSpec((tk, dout_pad), lambda i, k: (k, 0)),   # w2 K-slice
                    pl.BlockSpec((1, dout_pad), lambda i, k: (0, 0)),    # b2
                    pl.BlockSpec((1, dout_pad), lambda i, k: (0, 0)),    # ln gamma
                    pl.BlockSpec((1, dout_pad), lambda i, k: (0, 0)),    # ln beta
                ],
                out_specs=pl.BlockSpec((tm, dout_pad), lambda i, k: (i, 0)),
                scratch_shapes=[pltpu.VMEM((tm, dout_pad), jnp.float32)],
            ),
            compiler_params=pltpu.CompilerParams(
                dimension_semantics=("parallel", "arbitrary"),
                vmem_limit_bytes=vmem_limit,
            ),
        )(x2d, w1_p, b1_p, w2_p, b2_p, g_p, beta_p)

    out = out[:m, :d_out]
    return out.reshape(*lead, d_out)


# --------------------------------------------------------------------------
# Parameter init & pure-JAX reference
# --------------------------------------------------------------------------
def init_mlp_params(key, in_features, hidden_features, out_features,
                    dtype=jnp.float32):
    """Deterministic init mimicking nn.Linear default (uniform +-1/sqrt(fan_in))
    and nn.LayerNorm default (ones / zeros). Weights stored as (in, out)."""
    k1, k2, k3, k4 = jax.random.split(key, 4)
    lim1 = 1.0 / (in_features ** 0.5)
    lim2 = 1.0 / (hidden_features ** 0.5)
    w1 = jax.random.uniform(k1, (in_features, hidden_features), dtype, -lim1, lim1)
    b1 = jax.random.uniform(k2, (hidden_features,), dtype, -lim1, lim1)
    w2 = jax.random.uniform(k3, (hidden_features, out_features), dtype, -lim2, lim2)
    b2 = jax.random.uniform(k4, (out_features,), dtype, -lim2, lim2)
    gamma = jnp.ones((out_features,), dtype)
    beta = jnp.zeros((out_features,), dtype)
    return (w1, b1, w2, b2, gamma, beta)


def mlp_reference(x, params):
    """Pure-JAX f32 reference for correctness checking."""
    w1, b1, w2, b2, gamma, beta = params
    h = x @ w1 + b1
    h = 0.5 * h * (1.0 + lax.erf(h * _INV_SQRT2))
    y = h @ w2 + b2
    mu = jnp.mean(y, axis=-1, keepdims=True)
    var = jnp.mean((y - mu) ** 2, axis=-1, keepdims=True)
    y = (y - mu) * lax.rsqrt(var + _LN_EPS)
    return y * gamma + beta


if __name__ == "__main__":
    key = jax.random.PRNGKey(0)
    k_x, k_p = jax.random.split(key)

    batch, seq = 2, 8
    in_features, hidden_features, out_features = 32, 64, 32

    x = jax.random.normal(k_x, (batch, seq, in_features), jnp.float32)
    params = init_mlp_params(k_p, in_features, hidden_features, out_features)
    ref = mlp_reference(x, params)

    # Exact-precision path (f32 MXU operands), both kernel variants.
    out_res = mlp_forward(x, params, compute_dtype=jnp.float32,
                          weight_resident=True)
    out_ks = mlp_forward(x, params, compute_dtype=jnp.float32,
                         weight_resident=False)
    out_res, out_ks = jax.block_until_ready((out_res, out_ks))
    assert out_res.shape == (batch, seq, out_features)
    assert out_ks.shape == (batch, seq, out_features)
    assert jnp.allclose(out_res, ref, atol=1e-4, rtol=1e-4), "resident path mismatch"
    assert jnp.allclose(out_ks, ref, atol=1e-4, rtol=1e-4), "k-split path mismatch"

    # Default perf path: bf16 MXU operands, f32 accumulation / LN math.
    out_bf16 = jax.block_until_ready(mlp_forward(x, params))
    assert out_bf16.shape == (batch, seq, out_features)
    assert jnp.allclose(out_bf16, ref, atol=5e-2, rtol=5e-2), "bf16 path mismatch"

    print("KERNEL_OK")
</pallas_src>

<mosaic_0001>
module attributes {stable_mosaic.version = 11 : i64} {
  func.func @_mlp_kernel_resident(%arg0: i32, %arg1: memref<16x128xf32, #tpu.memory_space<vmem>>, %arg2: memref<128x128xf32, #tpu.memory_space<vmem>>, %arg3: memref<1x128xf32, #tpu.memory_space<vmem>>, %arg4: memref<128x128xf32, #tpu.memory_space<vmem>>, %arg5: memref<1x128xf32, #tpu.memory_space<vmem>>, %arg6: memref<1x128xf32, #tpu.memory_space<vmem>>, %arg7: memref<1x128xf32, #tpu.memory_space<vmem>>, %arg8: memref<16x128xf32, #tpu.memory_space<vmem>>) attributes {dimension_semantics = [#tpu.dimension_semantics<parallel>], iteration_bounds = array<i64: 1>, scalar_prefetch = 0 : i64, scratch_operands = 0 : i64, tpu.core_type = #tpu.core_type<tc>, window_params = [{transform_indices = @transform_0, window_bounds = array<i64: 16, 128>}, {pipeline_mode = #tpu.pipeline_mode<synchronous>, transform_indices = @transform_1, window_bounds = array<i64: 128, 128>}, {pipeline_mode = #tpu.pipeline_mode<synchronous>, transform_indices = @transform_2, window_bounds = array<i64: 1, 128>}, {pipeline_mode = #tpu.pipeline_mode<synchronous>, transform_indices = @transform_3, window_bounds = array<i64: 128, 128>}, {pipeline_mode = #tpu.pipeline_mode<synchronous>, transform_indices = @transform_4, window_bounds = array<i64: 1, 128>}, {pipeline_mode = #tpu.pipeline_mode<synchronous>, transform_indices = @transform_5, window_bounds = array<i64: 1, 128>}, {pipeline_mode = #tpu.pipeline_mode<synchronous>, transform_indices = @transform_6, window_bounds = array<i64: 1, 128>}, {transform_indices = @transform_7, window_bounds = array<i64: 16, 128>}]} {
    %c0 = arith.constant 0 : index
    %c0_0 = arith.constant 0 : index
    %0 = vector.load %arg1[%c0, %c0_0] : memref<16x128xf32, #tpu.memory_space<vmem>>, vector<16x128xf32>
    %c0_1 = arith.constant 0 : index
    %c0_2 = arith.constant 0 : index
    %1 = vector.load %arg2[%c0_1, %c0_2] : memref<128x128xf32, #tpu.memory_space<vmem>>, vector<128x128xf32>
    %cst = arith.constant dense<0.000000e+00> : vector<16x128xf32>
    %2 = tpu.matmul %0, %1, %cst {dimension_numbers = #tpu.dot_dimension_numbers<[1], [0], [0], [1], [0, 0, 1, 1], [], []>} : vector<16x128xf32>, vector<128x128xf32>, vector<16x128xf32> -> vector<16x128xf32>
    %c0_3 = arith.constant 0 : index
    %c0_4 = arith.constant 0 : index
    %3 = vector.load %arg3[%c0_3, %c0_4] : memref<1x128xf32, #tpu.memory_space<vmem>>, vector<1x128xf32>
    %4 = vector.broadcast %3 : vector<1x128xf32> to vector<16x128xf32>
    %5 = arith.addf %2, %4 : vector<16x128xf32>
    %cst_5 = arith.constant 5.000000e-01 : f32
    %6 = vector.broadcast %cst_5 : f32 to vector<16x128xf32>
    %7 = arith.mulf %6, %5 : vector<16x128xf32>
    %cst_6 = arith.constant 0.707106769 : f32
    %8 = vector.broadcast %cst_6 : f32 to vector<16x128xf32>
    %9 = arith.mulf %5, %8 : vector<16x128xf32>
    %10 = math.erf %9 : vector<16x128xf32>
    %cst_7 = arith.constant 1.000000e+00 : f32
    %11 = vector.broadcast %cst_7 : f32 to vector<16x128xf32>
    %12 = arith.addf %11, %10 : vector<16x128xf32>
    %13 = arith.mulf %7, %12 : vector<16x128xf32>
    %c0_8 = arith.constant 0 : index
    %c0_9 = arith.constant 0 : index
    %14 = vector.load %arg4[%c0_8, %c0_9] : memref<128x128xf32, #tpu.memory_space<vmem>>, vector<128x128xf32>
    %cst_10 = arith.constant dense<0.000000e+00> : vector<16x128xf32>
    %15 = tpu.matmul %13, %14, %cst_10 {dimension_numbers = #tpu.dot_dimension_numbers<[1], [0], [0], [1], [0, 0, 1, 1], [], []>} : vector<16x128xf32>, vector<128x128xf32>, vector<16x128xf32> -> vector<16x128xf32>
    %c0_11 = arith.constant 0 : index
    %c0_12 = arith.constant 0 : index
    %16 = vector.load %arg5[%c0_11, %c0_12] : memref<1x128xf32, #tpu.memory_space<vmem>>, vector<1x128xf32>
    %17 = vector.broadcast %16 : vector<1x128xf32> to vector<16x128xf32>
    %18 = arith.addf %15, %17 : vector<16x128xf32>
    %c0_13 = arith.constant 0 : index
    %c0_14 = arith.constant 0 : index
    %19 = vector.load %arg6[%c0_13, %c0_14] : memref<1x128xf32, #tpu.memory_space<vmem>>, vector<1x128xf32>
    %c0_15 = arith.constant 0 : index
    %c0_16 = arith.constant 0 : index
    %20 = vector.load %arg7[%c0_15, %c0_16] : memref<1x128xf32, #tpu.memory_space<vmem>>, vector<1x128xf32>
    %cst_17 = arith.constant dense<0.000000e+00> : vector<16xf32>
    %21 = vector.multi_reduction <add>, %18, %cst_17 [1] : vector<16x128xf32> to vector<16xf32>
    %22 = vector.shape_cast %21 : vector<16xf32> to vector<16x1xf32>
    %cst_18 = arith.constant 3.125000e-02 : f32
    %23 = vector.broadcast %cst_18 : f32 to vector<16x1xf32>
    %24 = arith.mulf %22, %23 : vector<16x1xf32>
    %25 = tpu.iota {dimensions = array<i32: 1>} : vector<16x128xi32>
    %c32_i32 = arith.constant 32 : i32
    %26 = vector.broadcast %c32_i32 : i32 to vector<16x128xi32>
    %27 = arith.cmpi slt, %25, %26 : vector<16x128xi32>
    %28 = vector.broadcast %24 : vector<16x1xf32> to vector<16x128xf32>
    %29 = arith.subf %18, %28 : vector<16x128xf32>
    %cst_19 = arith.constant 0.000000e+00 : f32
    %30 = vector.broadcast %cst_19 : f32 to vector<16x128xf32>
    %31 = arith.select %27, %29, %30 : vector<16x128xi1>, vector<16x128xf32>
    %32 = arith.mulf %31, %31 : vector<16x128xf32>
    %cst_20 = arith.constant dense<0.000000e+00> : vector<16xf32>
    %33 = vector.multi_reduction <add>, %32, %cst_20 [1] : vector<16x128xf32> to vector<16xf32>
    %34 = vector.shape_cast %33 : vector<16xf32> to vector<16x1xf32>
    %cst_21 = arith.constant 3.125000e-02 : f32
    %35 = vector.broadcast %cst_21 : f32 to vector<16x1xf32>
    %36 = arith.mulf %34, %35 : vector<16x1xf32>
    %37 = vector.broadcast %24 : vector<16x1xf32> to vector<16x128xf32>
    %38 = arith.subf %18, %37 : vector<16x128xf32>
    %cst_22 = arith.constant 9.99999974E-6 : f32
    %39 = vector.broadcast %cst_22 : f32 to vector<16x1xf32>
    %40 = arith.addf %36, %39 : vector<16x1xf32>
    %41 = math.rsqrt %40 : vector<16x1xf32>
    %42 = vector.broadcast %41 : vector<16x1xf32> to vector<16x128xf32>
    %43 = arith.mulf %38, %42 : vector<16x128xf32>
    %44 = vector.broadcast %19 : vector<1x128xf32> to vector<16x128xf32>
    %45 = arith.mulf %43, %44 : vector<16x128xf32>
    %46 = vector.broadcast %20 : vector<1x128xf32> to vector<16x128xf32>
    %47 = arith.addf %45, %46 : vector<16x128xf32>
    %c0_23 = arith.constant 0 : index
    %c0_24 = arith.constant 0 : index
    %48 = vector.load %arg8[%c0_23, %c0_24] : memref<16x128xf32, #tpu.memory_space<vmem>>, vector<16x128xf32>
    tpu.vector_store %arg8[%c0_23, %c0_24], %47 {strides = array<i32>} : memref<16x128xf32, #tpu.memory_space<vmem>>, vector<16x128xf32>,
    return
  }
  func.func @transform_0(%arg0: i32) -> (i32, i32) {
    %c0_i32 = arith.constant 0 : i32
    %c0_i32_0 = arith.constant 0 : i32
    return %arg0, %c0_i32 : i32, i32
  }
  func.func @transform_1(%arg0: i32) -> (i32, i32) {
    %c0_i32 = arith.constant 0 : i32
    %c0_i32_0 = arith.constant 0 : i32
    %c0_i32_1 = arith.constant 0 : i32
    return %c0_i32, %c0_i32_0 : i32, i32
  }
  func.func @transform_2(%arg0: i32) -> (i32, i32) {
    %c0_i32 = arith.constant 0 : i32
    %c0_i32_0 = arith.constant 0 : i32
    %c0_i32_1 = arith.constant 0 : i32
    return %c0_i32, %c0_i32_0 : i32, i32
  }
  func.func @transform_3(%arg0: i32) -> (i32, i32) {
    %c0_i32 = arith.constant 0 : i32
    %c0_i32_0 = arith.constant 0 : i32
    %c0_i32_1 = arith.constant 0 : i32
    return %c0_i32, %c0_i32_0 : i32, i32
  }
  func.func @transform_4(%arg0: i32) -> (i32, i32) {
    %c0_i32 = arith.constant 0 : i32
    %c0_i32_0 = arith.constant 0 : i32
    %c0_i32_1 = arith.constant 0 : i32
    return %c0_i32, %c0_i32_0 : i32, i32
  }
  func.func @transform_5(%arg0: i32) -> (i32, i32) {
    %c0_i32 = arith.constant 0 : i32
    %c0_i32_0 = arith.constant 0 : i32
    %c0_i32_1 = arith.constant 0 : i32
    return %c0_i32, %c0_i32_0 : i32, i32
  }
  func.func @transform_6(%arg0: i32) -> (i32, i32) {
    %c0_i32 = arith.constant 0 : i32
    %c0_i32_0 = arith.constant 0 : i32
    %c0_i32_1 = arith.constant 0 : i32
    return %c0_i32, %c0_i32_0 : i32, i32
  }
  func.func @transform_7(%arg0: i32) -> (i32, i32) {
    %c0_i32 = arith.constant 0 : i32
    %c0_i32_0 = arith.constant 0 : i32
    return %arg0, %c0_i32 : i32, i32
  }
}

</mosaic_0001>

<bundles_post_ra>
// kernel: tpu_custom_call.1
= control target key start
LH: loop header
LB: loop body
LE: loop exit
PB: predicated region body
PF: predicated region fallthrough
CT: control target
= control target key end

     0   :  { %12 = vsyncpa [#allocation3], 0  ;;  %s748_s0 = inlined_call_operand.hbm [shape: f32[16,128], index: 0, kind: input, shape index: {}]   ;;  %s749_s1 = inlined_call_operand.hbm [shape: f32[128,128], index: 1, kind: input, shape index: {}]   ;;  %s750_s2 = inlined_call_operand.vmem [shape: f32[1,128], index: 2, kind: input, shape index: {}]   ;;  %s751_s3 = inlined_call_operand.hbm [shape: f32[128,128], index: 3, kind: input, shape index: {}]   ;;  %s752_s4 = inlined_call_operand.vmem [shape: f32[1,128], index: 4, kind: input, shape index: {}]   ;;  %s753_s5 = inlined_call_operand.vmem [shape: f32[1,128], index: 5, kind: input, shape index: {}]   ;;  %s754_s6 = inlined_call_operand.vmem [shape: f32[1,128], index: 6, kind: input, shape index: {}]   ;;  %s755_s7 = inlined_call_operand.hbm [shape: f32[16,128], index: 7, kind: output, shape index: {}]  }
   0x1   :  { %13 = vsyncpa [#allocation6], 0 }
   0x2   :  { %14 = vsyncpa [#allocation4], 0  ;;  %s623_s24 = smov [#allocation5]   ;;  %s624_s26 = smov [#allocation2]  }
   0x3   :  { %s32_s25 = sshll.u32 %s623_s24, 4  ;;  %s20_s27 = sshll.u32 %s624_s26, 4  ;;  %s33_s25 = int_to_ptr.vmem [resolvable:$true] %s32_s25  ;;  %s669_s27 = int_to_ptr.vmem [resolvable:$true] %s20_s27 }
   0x4   :  { %s529_s30 = scalar_lea.hbm %s749_s1, 2048 }
   0x5   :  { %p530_p0 = scmp.ne.s32.totalorder %s749_s1, %s529_s30  ;;  %p533_p1 = scmp.lt.u32.totalorder %s529_s30, %s749_s1 }
   0x7   :  { %p535_p2 = pnand %p533_p1, %p530_p0 }
   0x9   :  { %538 = shalt.err (!%p535_p2)
}
   0xa   :  { %s539_s12 = scalar_lea.vmem %s33_s25, 2048  ;;  %p544_p4 = scmp.lt.s32.totalorder %s33_s25, %s33_s25 }
   0xb   :  { %p540_p3 = scmp.ne.s32.totalorder %s33_s25, %s539_s12  ;;  %p545_p5 = scmp.lt.s32.totalorder %s539_s12, %s539_s12 }
   0xd   :  { %p546_p6 = por %p545_p5, %p544_p4 }
   0xf   :  { %p547_p7 = pnand %p546_p6, %p540_p3 }
  0x11   :  { %550 = shalt.err (!%p547_p7)
}
  0x12   :  { %s625_s13 = smov 128   ;;  %s626_s14 = smov 8  }
  0x13   :  { %38 = dma.hbm_to_vmem [thread:$0]  %s749_s1, 2048, %s33_s25, [#allocation6], %s625_s13, %s625_s13, %s626_s14  }
  0x14   :  { %s551_s19 = scalar_lea.hbm %s748_s0, 256 }
  0x15   :  { %p552_p8 = scmp.ne.s32.totalorder %s748_s0, %s551_s19  ;;  %p555_p9 = scmp.lt.u32.totalorder %s551_s19, %s748_s0 }
  0x17   :  { %p557_p10 = pnand %p555_p9, %p552_p8 }
  0x19   :  { %560 = shalt.err (!%p557_p10)
}
  0x1a   :  { %s561_s24 = scalar_lea.vmem %s669_s27, 256  ;;  %p566_p12 = scmp.lt.s32.totalorder %s669_s27, %s669_s27 }
  0x1b   :  { %p562_p11 = scmp.ne.s32.totalorder %s669_s27, %s561_s24  ;;  %p567_p13 = scmp.lt.s32.totalorder %s561_s24, %s561_s24 }
  0x1d   :  { %p568_p0 = por %p567_p13, %p566_p12 }
  0x1f   :  { %p569_p1 = pnand %p568_p0, %p562_p11 }
  0x21   :  { %572 = shalt.err (!%p569_p1)
}
  0x22   :  { %26 = dma.hbm_to_vmem [thread:$0]  %s748_s0, 256, %s669_s27, [#allocation3], %s625_s13, %s625_s13, %s626_s14  }
  0x23   :  { %s627_s26 = smov [#allocation7]   ;;  %s573_s8 = scalar_lea.hbm %s751_s3, 2048 }
  0x24   :  { %s46_s28 = sshll.u32 %s627_s26, 4  ;;  %p574_p2 = scmp.ne.s32.totalorder %s751_s3, %s573_s8  ;;  %s47_s28 = int_to_ptr.vmem [resolvable:$true] %s46_s28 }
  0x25   :  { %p577_p3 = scmp.lt.u32.totalorder %s573_s8, %s751_s3 }
  0x27   :  { %p579_p4 = pnand %p577_p3, %p574_p2 }
  0x29   :  { %582 = shalt.err (!%p579_p4)
}
  0x2a   :  { %s583_s15 = scalar_lea.vmem %s47_s28, 2048  ;;  %p588_p6 = scmp.lt.s32.totalorder %s47_s28, %s47_s28 }
  0x2b   :  { %p584_p5 = scmp.ne.s32.totalorder %s47_s28, %s583_s15  ;;  %p589_p7 = scmp.lt.s32.totalorder %s583_s15, %s583_s15 }
  0x2d   :  { %p590_p8 = por %p589_p7, %p588_p6 }
  0x2f   :  { %p591_p9 = pnand %p590_p8, %p584_p5 }
  0x31   :  { %594 = shalt.err (!%p591_p9)
}
  0x32   :  { %52 = dma.hbm_to_vmem [thread:$0]  %s751_s3, 2048, %s47_s28, [#allocation6], %s625_s13, %s625_s13, %s626_s14  }
  0x33   :  { %617 = dma.done.wait [#allocation3], 256  }
  0x34   :  { %618 = vsyncadd [#allocation3], 4294967040 }
  0x35   :  { %619 = dma.done.wait [#allocation6], 4096  }
  0x36   :  { %620 = vsyncadd [#allocation6], 4294963200  ;;  %v70_v0 = vld [vmem:[#allocation5] sm:$0xff]  ;;  %v71_v1 = vld [vmem:[#allocation5 + $0x8] sm:$0xff]  ;;  %s628_s21 = smov [#allocation8]  }
  0x37   :  { %v72_v2 = vld [vmem:[#allocation5 + $0x10] sm:$0xff]  ;;  %v451_v3 = vpack.c.bf16 %v71_v1, %v70_v0  ;;  %v73_v4 = vld [vmem:[#allocation5 + $0x18] sm:$0xff]  ;;  %v74_v6 = vld [vmem:[#allocation5 + $0x20] sm:$0xff]  ;;  %s328_s22 = sshll.u32 %s628_s21, 4  ;;  %s329_s22 = int_to_ptr.vmem [resolvable:$true] %s328_s22 }
  0x38   :  { %v455_v5 = vpack.c.bf16 %v73_v4, %v72_v2  ;;  %v75_v7 = vld [vmem:[#allocation5 + $0x28] sm:$0xff]  ;;  %v76_v9 = vld [vmem:[#allocation5 + $0x30] sm:$0xff]  ;;  %v77_v10 = vld [vmem:[#allocation5 + $0x38] sm:$0xff]  ;;  %s595_s23 = scalar_lea.vmem %s329_s22, 256  ;;  %p600_p11 = scmp.lt.s32.totalorder %s329_s22, %s329_s22 }
  0x39   :  { %452 = vmatprep.subr.bf16.mxu0 %v451_v3  ;;  %v459_v8 = vpack.c.bf16 %v75_v7, %v74_v6  ;;  %v68_v11 = vld [vmem:[#allocation2] sm:$0xff]  ;;  %v178_v12 = vld [vmem:[#allocation7] sm:$0xff]  ;;  %v179_v13 = vld [vmem:[#allocation7 + $0x8] sm:$0xff]  ;;  %v463_v20 = vpack.c.bf16 %v77_v10, %v76_v9  ;;  %v284_v6 = vlaneseq  ;;  %p596_p10 = scmp.ne.s32.totalorder %s329_s22, %s595_s23  ;;  %p601_p12 = scmp.lt.s32.totalorder %s595_s23, %s595_s23 }
  0x3a   :  { %454 = vmatpush3.bf16.msra.mxu0 %v451_v3  ;;  %413 = vmatprep.mubr.f32.mxu0 %v68_v11  ;;  %v180_v14 = vld [vmem:[#allocation7 + $0x10] sm:$0xff]  ;;  %v483_v15 = vpack.c.bf16 %v179_v13, %v178_v12  ;;  %v181_v16 = vld [vmem:[#allocation7 + $0x18] sm:$0xff]  ;;  %v182_v18 = vld [vmem:[#allocation7 + $0x20] sm:$0xff] }
  0x3b   :  { %456 = vmatprep.subr.bf16.mxu0 %v455_v5  ;;  %v487_v17 = vpack.c.bf16 %v181_v16, %v180_v14  ;;  %v183_v19 = vld [vmem:[#allocation7 + $0x28] sm:$0xff]  ;;  %v78_v21 = vld [vmem:[#allocation5 + $0x40] sm:$0xff]  ;;  %v80_v25 = vld [vmem:[#allocation5 + $0x50] sm:$0xff]  ;;  %v285_v7 = vand.u32 127, %v284_v6  ;;  %p602_p13 = por %p601_p12, %p600_p11 }
  0x3c   :  { %484 = vmatprep.subr.bf16.mxu1 %v483_v15  ;;  %v79_v22 = vld [vmem:[#allocation5 + $0x48] sm:$0xff]  ;;  %v491_v23 = vpack.c.bf16 %v183_v19, %v182_v18  ;;  %v81_v26 = vld [vmem:[#allocation5 + $0x58] sm:$0xff]  ;;  %v82_v28 = vld [vmem:[#allocation5 + $0x60] sm:$0xff] }
  0x3d   :  { %486 = vmatpush3.bf16.msra.mxu1 %v483_v15  ;;  %v467_v24 = vpack.c.bf16 %v79_v22, %v78_v21  ;;  %v471_v27 = vpack.c.bf16 %v81_v26, %v80_v25  ;;  %v83_v29 = vld [vmem:[#allocation5 + $0x68] sm:$0xff]  ;;  %v84_v31 = vld [vmem:[#allocation5 + $0x70] sm:$0xff]  ;;  %v85_v32 = vld [vmem:[#allocation5 + $0x78] sm:$0xff]  ;;  %vm286_vm0 = vcmp.lt.s32.totalorder %v285_v7, 32  ;;  %p603_p0 = pnand %p602_p13, %p596_p10 }
  0x3e   :  { %458 = vmatpush3.bf16.msra.mxu0 %v455_v5  ;;  %488 = vmatprep.subr.bf16.mxu1 %v487_v17  ;;  %v475_v30 = vpack.c.bf16 %v83_v29, %v82_v28  ;;  %v479_v33 = vpack.c.bf16 %v85_v32, %v84_v31  ;;  %v69_v34 = vld [vmem:[#allocation2 + $0x8] sm:$0xff]  ;;  %v184_v35 = vld [vmem:[#allocation7 + $0x30] sm:$0xff]  ;;  %v186_v38 = vld [vmem:[#allocation7 + $0x40] sm:$0xff] }
  0x3f   :  { %460 = vmatprep.subr.bf16.mxu0 %v459_v8  ;;  %v185_v36 = vld [vmem:[#allocation7 + $0x38] sm:$0xff]  ;;  %v187_v39 = vld [vmem:[#allocation7 + $0x48] sm:$0xff]  ;;  %v188_v41 = vld [vmem:[#allocation7 + $0x50] sm:$0xff] }
  0x40   :  { %v495_v37 = vpack.c.bf16 %v185_v36, %v184_v35  ;;  %v499_v40 = vpack.c.bf16 %v187_v39, %v186_v38  ;;  %v189_v42 = vld [vmem:[#allocation7 + $0x58] sm:$0xff]  ;;  %v190_v44 = vld [vmem:[#allocation7 + $0x60] sm:$0xff]  ;;  %v191_v45 = vld [vmem:[#allocation7 + $0x68] sm:$0xff] }
  0x41   :  { %490 = vmatpush3.bf16.msra.mxu1 %v487_v17  ;;  %v503_v43 = vpack.c.bf16 %v189_v42, %v188_v41  ;;  %v507_v46 = vpack.c.bf16 %v191_v45, %v190_v44  ;;  %v192_v47 = vld [vmem:[#allocation7 + $0x70] sm:$0xff]  ;;  %v193_v48 = vld [vmem:[#allocation7 + $0x78] sm:$0xff] }
  0x42   :  { %462 = vmatpush3.bf16.msra.mxu0 %v459_v8  ;;  %492 = vmatprep.subr.bf16.mxu1 %v491_v23  ;;  %v511_v49 = vpack.c.bf16 %v193_v48, %v192_v47  ;;  %v341_v50 = vld [vmem:[%s750_s2] ss:$0 sm:$0xff] }
  0x43   :  { %464 = vmatprep.subr.bf16.mxu0 %v463_v20  ;;  %v342_v1 = vld [vmem:[%s752_s4] ss:$0 sm:$0xff] }
  0x44   :  { %v343_v25 = vld [vmem:[%s753_s5] ss:$0 sm:$0xff] }
  0x45   :  { %494 = vmatpush3.bf16.msra.mxu1 %v491_v23 }
  0x46   :  { %466 = vmatpush3.bf16.msra.mxu0 %v463_v20  ;;  %496 = vmatprep.subr.bf16.mxu1 %v495_v37 }
  0x47   :  { %468 = vmatprep.subr.bf16.mxu0 %v467_v24 }
  0x49   :  { %498 = vmatpush3.bf16.msra.mxu1 %v495_v37 }
  0x4a   :  { %470 = vmatpush3.bf16.msra.mxu0 %v467_v24  ;;  %500 = vmatprep.subr.bf16.mxu1 %v499_v40 }
  0x4b   :  { %472 = vmatprep.subr.bf16.mxu0 %v471_v27 }
  0x4d   :  { %502 = vmatpush3.bf16.msra.mxu1 %v499_v40 }
  0x4e   :  { %474 = vmatpush3.bf16.msra.mxu0 %v471_v27  ;;  %504 = vmatprep.subr.bf16.mxu1 %v503_v43  ;;  %v344_v27 = vld [vmem:[%s754_s6] ss:$0 sm:$0xff] }
  0x4f   :  { %476 = vmatprep.subr.bf16.mxu0 %v475_v30 }
  0x51   :  { %506 = vmatpush3.bf16.msra.mxu1 %v503_v43 }
  0x52   :  { %478 = vmatpush3.bf16.msra.mxu0 %v475_v30  ;;  %508 = vmatprep.subr.bf16.mxu1 %v507_v46 }
  0x53   :  { %480 = vmatprep.subr.bf16.mxu0 %v479_v33 }
  0x55   :  { %510 = vmatpush3.bf16.msra.mxu1 %v507_v46 }
  0x56   :  { %482 = vmatpush3.bf16.msra.mxu0 %v479_v33  ;;  %512 = vmatprep.subr.bf16.mxu1 %v511_v49 }
  0x59   :  { %414 = vmatmul.mubr.f32.vlgmr.msra.gmra.mrb[0].mxu0 %v69_v34  ;;  %514 = vmatpush3.bf16.msra.mxu1 %v511_v49 }
 0x12c   :  { %v415_v51 = vpop.f32.mrb[0].mxu0 }
 0x12d   :  { %v165_v52 = vadd.f32 %v415_v51, %v341_v50  ;;  %v159_v53 = vpop.f32.mrb[1].mxu0 }
 0x12e   :  { %v160_v54 = vadd.f32 %v341_v50, %v159_v53 }
 0x12f   :  { %v171_v55 = vmul.f32 0.70710677, %v165_v52  ;;  %v169_v62 = vmul.f32 0.5, %v165_v52 }
 0x130   :  { %v170_v56 = vmul.f32 0.70710677, %v160_v54  ;;  %v168_v60 = vmul.f32 0.5, %v160_v54 }
 0x131   :  { %521 = verf.f32 %v171_v55 }
 0x132   :  { %523 = verf.f32 %v170_v56 }
 0x13b   :  { %v522_v57 = vpop.eup %521 }
 0x13c   :  { %v524_v58 = vpop.eup %523  ;;  %v175_v59 = vadd.f32 1.0, %v522_v57 }
 0x13d   :  { %v174_v61 = vadd.f32 1.0, %v524_v58 }
 0x13e   :  { %v177_v0 = vmul.f32 %v175_v59, %v169_v62 }
 0x13f   :  { %v176_v63 = vmul.f32 %v174_v61, %v168_v60 }
 0x141   :  { %448 = vmatprep.mubr.f32.mxu1 %v176_v63 }
 0x142   :  { %449 = vmatmul.mubr.f32.vlgmr.msra.gmra.mrb[0].mxu1 %v177_v0 }
 0x215   :  { %v450_v2 = vpop.f32.mrb[0].mxu1 }
 0x216   :  { %v267_v3 = vpop.f32.mrb[1].mxu1  ;;  %v273_v5 = vadd.f32 %v450_v2, %v342_v1 }
 0x217   :  { %v268_v4 = vadd.f32 %v342_v1, %v267_v3 }
 0x219   :  { %278 = vadd.xlane.f32.xlu0 %v268_v4 }
 0x21d   :  { %280 = vadd.xlane.f32.xlu0 %v273_v5 }
 0x2a6   :  { %v279_v8 = vpop.xlane.xlu0 %278 }
 0x2a7   :  { %v282_v9 = vmul.f32 0.03125, %v279_v8 }
 0x2a9   :  { %v287_v10 = vsub.f32 %v268_v4, %v282_v9 }
 0x2aa   :  { %v281_v11 = vpop.xlane.xlu0 %280 }
 0x2ab   :  { %v283_v12 = vmul.f32 0.03125, %v281_v11  ;;  %v289_v13 = vsel %vm286_vm0, %v287_v10, 0.0 }
 0x2ac   :  { %v291_v14 = vmul.f32 %v289_v13, %v289_v13 }
 0x2ad   :  { %v288_v15 = vsub.f32 %v273_v5, %v283_v12 }
 0x2ae   :  { %293 = vadd.xlane.f32.xlu1 %v291_v14 }
 0x2af   :  { %v290_v16 = vsel %vm286_vm0, %v288_v15, 0.0 }
 0x2b0   :  { %v292_v17 = vmul.f32 %v290_v16, %v290_v16 }
 0x2b2   :  { %295 = vadd.xlane.f32.xlu1 %v292_v17 }
 0x33b   :  { %v294_v18 = vpop.xlane.xlu1 %293 }
 0x33c   :  { %v297_v19 = vmul.f32 0.03125, %v294_v18 }
 0x33e   :  { %v299_v20 = vadd.f32 1e-05, %v297_v19 }
 0x33f   :  { %v296_v21 = vpop.xlane.xlu1 %295 }
 0x340   :  { %525 = vrsqrt.f32 %v299_v20  ;;  %v298_v22 = vmul.f32 0.03125, %v296_v21 }
 0x342   :  { %v300_v23 = vadd.f32 1e-05, %v298_v22 }
 0x344   :  { %527 = vrsqrt.f32 %v300_v23 }
 0x34a   :  { %v526_v24 = vpop.eup %525 }
 0x34b   :  { %v303_v26 = vmul.f32 %v526_v24, %v287_v10 }
 0x34d   :  { %v311_v28 = vmul.f32 %v343_v25, %v303_v26 }
 0x34e   :  { %v528_v29 = vpop.eup %527 }
 0x34f   :  { %v304_v30 = vmul.f32 %v528_v29, %v288_v15  ;;  %v319_v31 = vadd.f32 %v344_v27, %v311_v28 }
 0x351   :  { %v312_v32 = vmul.f32 %v343_v25, %v304_v30  ;;  %321 = vst [vmem:[#allocation8] sm:$0xff] %v319_v31 }
 0x353   :  { %v320_v33 = vadd.f32 %v344_v27, %v312_v32 }
 0x355   :  { %322 = vst [vmem:[#allocation8 + $0x8] sm:$0xff] %v320_v33 }
 0x356   :  { %606 = shalt.err (!%p603_p0)
}
 0x357   :  { %s607_s24 = scalar_lea.hbm %s755_s7, 256 }
 0x358   :  { %p608_p1 = scmp.ne.s32.totalorder %s755_s7, %s607_s24  ;;  %p611_p2 = scmp.lt.u32.totalorder %s607_s24, %s755_s7 }
 0x35a   :  { %p613_p3 = pnand %p611_p2, %p608_p1 }
 0x35c   :  { %616 = shalt.err (!%p613_p3)
}
 0x35d   :  { %334 = dma.vmem_to_hbm [thread:$0]  %s329_s22, 256, %s755_s7, [#allocation4], %s625_s13, %s625_s13, %s626_s14  }
 0x35e   :  { %621 = dma.done.wait [#allocation4], 256  }
 0x35f   :  { %622 = vsyncadd [#allocation4], 4294967040 }
 0x360   :  { %338 = vsyncpa [#allocation3], 1 }
 0x361   :  { %339 = vsyncpa [#allocation6], 1 }
 0x362   :  { %340 = vsyncpa [#allocation4], 1 }

</bundles_post_ra>
